<compile_context>
chip_gen: v5e
topology: v5e:2x2
jax: 0.10.0
libtpu: 0.0.40
codegen_flags: <defaults>
</compile_context>

<pallas_src>
import jax
import jax.numpy as jnp
from jax.experimental import pallas as pl
from jax.experimental.pallas import tpu as pltpu


def _copy_kernel(x_ref, o_ref):
    # Pure pass-through: one VMEM load + one VMEM store per tile.
    o_ref[...] = x_ref[...]


def _sublane_multiple(dtype) -> int:
    """Minimum sublane packing for the dtype (8 f32 / 16 bf16 / 32 int8-fp8)."""
    itemsize = jnp.dtype(dtype).itemsize
    return {4: 8, 2: 16, 1: 32}.get(itemsize, 8)


def _block_budget():
    """(target block bytes, scoped-VMEM limit) tuned per chip generation."""
    vmem = None
    try:
        vmem = pltpu.get_tpu_info().vmem_capacity_bytes
    except Exception:
        vmem = None
    if vmem is not None and vmem <= 96 * 1024 * 1024:
        # v7x: 64 MiB VMEM per TC -> 6 MiB blocks, 4x block <= 24 MiB << 40 MiB.
        return 6 * 1024 * 1024, 40 << 20
    # v5e / v6e: 128 MiB physical VMEM -> 8 MiB blocks, raise scoped limit.
    return 8 * 1024 * 1024, 48 << 20


def _tiled_copy_2d(x2, sub):
    """Tiled, lane-dense HBM->HBM copy of a (rows, lane) array, lane % 128 == 0."""
    rows, lane = x2.shape
    itemsize = jnp.dtype(x2.dtype).itemsize
    target_bytes, vmem_limit = _block_budget()

    # Row block: multiple of the dtype's sublane packing, ~target_bytes each.
    max_rows = max(sub, (target_bytes // (lane * itemsize)) // sub * sub)

    if rows <= max_rows:
        rb = rows  # full extent (legal even when rows is not a sublane multiple)
        # v7x has 2 TensorCores: give medium tensors at least 2 parallel steps.
        if rows * lane * itemsize >= (2 * 1024 * 1024) and rows >= 2 * sub:
            rb = (((rows + 1) // 2) + sub - 1) // sub * sub
    else:
        rb = max_rows  # ragged last block is handled (masked) by Pallas

    grid = pl.cdiv(rows, rb)
    return pl.pallas_call(
        _copy_kernel,
        out_shape=jax.ShapeDtypeStruct((rows, lane), x2.dtype),
        grid_spec=pltpu.PrefetchScalarGridSpec(
            num_scalar_prefetch=0,
            grid=(grid,),
            in_specs=[pl.BlockSpec((rb, lane), lambda i: (i, 0))],
            out_specs=pl.BlockSpec((rb, lane), lambda i: (i, 0)),
        ),
        compiler_params=pltpu.CompilerParams(
            dimension_semantics=("parallel",),
            vmem_limit_bytes=vmem_limit,
        ),
    )(x2)


def pallas_identity(x, materialize: bool = False):
    """Identity(x) == x.

    materialize=False (default): return x unchanged — zero HBM traffic, the
    optimal implementation (matches nn.Identity, which returns the input).
    materialize=True: produce a fresh buffer via a tiled Pallas copy kernel.
    """
    if not materialize:
        return x

    orig_shape = x.shape
    total = int(x.size)
    if total == 0:
        return x

    sub = _sublane_multiple(x.dtype)

    if total % 128 == 0:
        # Widen the lane axis (multiples of 128, up to 2048) while keeping at
        # least `sub` rows, so every store is an unmasked full-width vst.
        lane = 128
        while (lane * 2 <= 2048
               and total % (lane * 2) == 0
               and total // (lane * 2) >= sub):
            lane *= 2
        rows = total // lane
        out = _tiled_copy_2d(x.reshape(rows, lane), sub)
        return out.reshape(orig_shape)

    # Non-128-divisible sizes: pad the flat view up to a (sub x 128) multiple,
    # run the same lane-dense tiled copy, then slice the padding back off.
    chunk = sub * 128
    padded = ((total + chunk - 1) // chunk) * chunk
    xf = jnp.pad(x.reshape(-1), (0, padded - total))
    out = _tiled_copy_2d(xf.reshape(padded // 128, 128), sub)
    return out.reshape(-1)[:total].reshape(orig_shape)


class Identity:
    """Pallas port of PyTorch nn.Identity: forward(x) -> x (zero-cost)."""

    def __init__(self):
        pass

    def __call__(self, x):
        # Identity is semantically free: no kernel launch, no HBM copy.
        return pallas_identity(x, materialize=False)


if __name__ == "__main__":
    key = jax.random.PRNGKey(0)
    x = jax.random.normal(key, (2, 4, 16, 16), dtype=jnp.float32)

    # Optimal path: the module returns x unchanged (no kernel, no copy).
    mod = Identity()
    y_fast = mod(x)
    assert y_fast is x or bool(jnp.array_equal(y_fast, x)), "identity mismatch"

    # Materialized Pallas copy path: run the kernel once on TPU.
    y = pallas_identity(x, materialize=True)
    jax.block_until_ready(y)
    assert y.shape == x.shape and y.dtype == x.dtype
    assert bool(jnp.array_equal(y, x)), "materialized identity mismatch"

    # Non-128-divisible size -> padded, lane-dense tiled path (no 1-row block).
    x_odd = jax.random.normal(jax.random.PRNGKey(1), (3, 5, 7), dtype=jnp.float32)
    y_odd = pallas_identity(x_odd, materialize=True)
    jax.block_until_ready(y_odd)
    assert bool(jnp.array_equal(y_odd, x_odd)), "padded identity mismatch"

    # bf16 exercises the 16-sublane packing alignment.
    x_bf = jax.random.normal(jax.random.PRNGKey(2), (4, 8, 128), dtype=jnp.bfloat16)
    y_bf = pallas_identity(x_bf, materialize=True)
    jax.block_until_ready(y_bf)
    assert bool(jnp.array_equal(y_bf, x_bf)), "bf16 identity mismatch"

    print("KERNEL_OK")
</pallas_src>

<mosaic_0001>
module attributes {stable_mosaic.version = 11 : i64} {
  func.func @_copy_kernel(%arg0: i32, %arg1: memref<8x256xf32, #tpu.memory_space<vmem>>, %arg2: memref<8x256xf32, #tpu.memory_space<vmem>>) attributes {dimension_semantics = [#tpu.dimension_semantics<parallel>], iteration_bounds = array<i64: 1>, scalar_prefetch = 0 : i64, scratch_operands = 0 : i64, tpu.core_type = #tpu.core_type<tc>, window_params = [{transform_indices = @transform_0, window_bounds = array<i64: 8, 256>}, {transform_indices = @transform_1, window_bounds = array<i64: 8, 256>}]} {
    %c0 = arith.constant 0 : index
    %c0_0 = arith.constant 0 : index
    %0 = vector.load %arg1[%c0, %c0_0] : memref<8x256xf32, #tpu.memory_space<vmem>>, vector<8x256xf32>
    %c0_1 = arith.constant 0 : index
    %c0_2 = arith.constant 0 : index
    %1 = vector.load %arg2[%c0_1, %c0_2] : memref<8x256xf32, #tpu.memory_space<vmem>>, vector<8x256xf32>
    tpu.vector_store %arg2[%c0_1, %c0_2], %0 {strides = array<i32>} : memref<8x256xf32, #tpu.memory_space<vmem>>, vector<8x256xf32>,
    return
  }
  func.func @transform_0(%arg0: i32) -> (i32, i32) {
    %c0_i32 = arith.constant 0 : i32
    %c0_i32_0 = arith.constant 0 : i32
    return %arg0, %c0_i32 : i32, i32
  }
  func.func @transform_1(%arg0: i32) -> (i32, i32) {
    %c0_i32 = arith.constant 0 : i32
    %c0_i32_0 = arith.constant 0 : i32
    return %arg0, %c0_i32 : i32, i32
  }
}

</mosaic_0001>

<bundles_post_ra>
// kernel: tpu_custom_call.1
= control target key start
LH: loop header
LB: loop body
LE: loop exit
PB: predicated region body
PF: predicated region fallthrough
CT: control target
= control target key end

     0   :  { %6 = vsyncpa [#allocation3], 0  ;;  %s116_s0 = inlined_call_operand.hbm [shape: f32[8,256], index: 0, kind: input, shape index: {}]   ;;  %s117_s1 = inlined_call_operand.hbm [shape: f32[8,256], index: 1, kind: output, shape index: {}]  }
   0x1   :  { %7 = vsyncpa [#allocation4], 0  ;;  %s13_s8 = sshll.u32 %s116_s0, 4  ;;  %s98_s9 = smov [#allocation2]   ;;  %s14_s8 = int_to_ptr.hbm [resolvable:$true] %s13_s8 }
   0x2   :  { %s15_s10 = sshll.u32 %s98_s9, 4  ;;  %s16_s10 = int_to_ptr.vmem [resolvable:$true] %s15_s10 }
   0x3   :  { %18 = dma.hbm_to_vmem [thread:$0]  %s14_s8, 256, %s16_s10, [#allocation3]  }
   0x4   :  { %94 = dma.done.wait [#allocation3], 256  }
   0x5   :  { %95 = vsyncadd [#allocation3], 4294967040  ;;  %s99_s11 = smov [#allocation5]   ;;  %s34_s15 = sshll.u32 %s117_s1, 4  ;;  %v23_v0 = vld [vmem:[#allocation2] sm:$0xff]  ;;  %v24_v1 = vld [vmem:[#allocation2 + $0x8] sm:$0xff]  ;;  %s35_s15 = int_to_ptr.hbm [resolvable:$true] %s34_s15 }
   0x6   :  { %s32_s12 = sshll.u32 %s99_s11, 4  ;;  %25 = vst [vmem:[#allocation5] sm:$0xff] %v23_v0  ;;  %s33_s12 = int_to_ptr.vmem [resolvable:$true] %s32_s12 }
   0x7   :  { %26 = vst [vmem:[#allocation5 + $0x8] sm:$0xff] %v24_v1 }
   0x8   :  { %37 = dma.vmem_to_hbm [thread:$0]  %s33_s12, 256, %s35_s15, [#allocation4]  }
   0x9   :  { %96 = dma.done.wait [#allocation4], 256  }
   0xa   :  { %97 = vsyncadd [#allocation4], 4294967040 }
   0xb   :  { %42 = vsyncpa [#allocation3], 1 }
   0xc   :  { %43 = vsyncpa [#allocation4], 1 }

</bundles_post_ra>
